<compile_context>
chip_gen: v6e
topology: v6e:2x2x1
jax: 0.10.0
libtpu: 0.0.40
codegen_flags: <defaults>
</compile_context>

<pallas_src>
import functools

import jax
import jax.numpy as jnp
from jax.experimental import pallas as pl
from jax.experimental.pallas import tpu as pltpu


# --------------------------------------------------------------------------
# Pallas LayerNorm kernel (torch semantics: gamma*(x-mean)/(std+eps)+beta,
# std is the unbiased (ddof=1) standard deviation, eps added to std).
# --------------------------------------------------------------------------
def _layernorm_kernel(x_ref, gamma_ref, beta_ref, o_ref, *, eps, d_valid):
    x = x_ref[...].astype(jnp.float32)                        # (TR, D_pad)
    d_pad = x.shape[-1]

    inv_d = 1.0 / d_valid
    inv_dm1 = 1.0 / max(d_valid - 1, 1)                       # guard d_model==1

    # Padded columns (if any) are zero, so the plain sum gives the true mean.
    mean = jnp.sum(x, axis=-1, keepdims=True) * inv_d         # (TR, 1)
    diff = x - mean

    # Two-pass centered sum of squares (numerically robust). Mask the padded
    # columns out of the variance reduction only when padding exists.
    if d_valid != d_pad:
        col = jax.lax.broadcasted_iota(jnp.int32, (1, d_pad), 1)
        diff_v = jnp.where(col < d_valid, diff, 0.0)
    else:
        diff_v = diff
    var = jnp.sum(diff_v * diff_v, axis=-1, keepdims=True) * inv_dm1
    std = jnp.sqrt(var)

    # Per-row reciprocal goes to the EUP slot; approx=False keeps 1e-5 tol.
    inv = pl.reciprocal(std + eps, approx=False)              # (TR, 1)

    gamma = gamma_ref[...]                                    # (1, D_pad), f32
    beta = beta_ref[...]                                      # (1, D_pad), f32
    # gamma/beta are zero in padded columns, so padded output columns are 0
    # (and are sliced off in the wrapper anyway).
    y = (diff * inv) * gamma + beta
    o_ref[...] = y.astype(o_ref.dtype)


# --------------------------------------------------------------------------
# Generation-aware VMEM budgeting + tile choice.
# --------------------------------------------------------------------------
def _vmem_limits():
    """(tiling budget, vmem_limit_bytes) derived from the chip's VMEM size."""
    try:
        cap = int(pltpu.get_tpu_info().vmem_capacity_bytes)
    except Exception:
        cap = 64 << 20                      # conservative fallback (v7x per-TC)
    # ~3/8 of VMEM: ~24 MiB on a 64 MiB/TC chip (v7x), ~48 MiB on v5e/v6e.
    budget = int(min(cap * 3 // 8, 48 << 20))
    # Scoped limit must cover double-buffered in/out tiles + temporaries but
    # leave headroom; the default scoped limit (16/32 MiB) would reject the
    # larger tiles, so set it explicitly.
    vmem_limit = int(min(cap * 3 // 4, max(2 * budget, 8 << 20)))
    return budget, vmem_limit


def _choose_row_tile(rows, d_pad, itemsize, budget_bytes):
    """Row tile: as large as the budget allows, but keep enough grid steps."""
    base = 16 if itemsize < 4 else 8        # bf16 packs 16 rows per vreg group
    # Per-row VMEM footprint: double-buffered input + output tiles plus ~4
    # f32 elementwise temporaries live inside the kernel body.
    per_row_bytes = d_pad * (2 * 2 * itemsize + 4 * 4)
    max_tr = max(base, budget_bytes // per_row_bytes)
    max_tr = min(max_tr, 1024)              # diminishing returns past ~1024 rows

    # Keep >= ~16 grid steps (≈8 per core on a 2-TC v7x chip) so the pipeline
    # has work to overlap and both cores are fed — but never shrink the tile
    # below ~256 rows just to manufacture steps (per-step overhead ~0.35 µs).
    min_steps = 16
    tr = min(max_tr, max(256, rows // min_steps))
    tr = max(base, (tr // base) * base)

    if rows < base:
        return rows                         # full-extent block (legal, tiny input)
    # Never make a single block larger than the (base-rounded) row extent.
    rows_rounded = ((rows + base - 1) // base) * base
    return min(tr, rows_rounded)


def pallas_layernorm(x, gamma, beta, *, eps=1e-6):
    """x: (..., d_model) -> same shape, normalized over the last axis."""
    orig_shape = x.shape
    d = orig_shape[-1]
    x2 = x.reshape(-1, d)                                     # (rows, D)
    rows = x2.shape[0]

    # Lane-dense output path: pad d_model to a multiple of 128 when it is
    # large enough that unmasked stores beat the extra padded HBM traffic.
    if d > 128 and d % 128 != 0:
        d_pad = ((d + 127) // 128) * 128
        x2 = jnp.pad(x2, ((0, 0), (0, d_pad - d)))
    else:
        d_pad = d

    # Hoisted parameter prep (done once, outside the grid loop).
    gamma2 = jnp.pad(gamma.astype(jnp.float32).reshape(1, d),
                     ((0, 0), (0, d_pad - d)))
    beta2 = jnp.pad(beta.astype(jnp.float32).reshape(1, d),
                    ((0, 0), (0, d_pad - d)))

    itemsize = jnp.dtype(x.dtype).itemsize
    budget, vmem_limit = _vmem_limits()
    tr = _choose_row_tile(rows, d_pad, itemsize, budget)
    grid = pl.cdiv(rows, tr)   # ragged tail rows: OOB reads are row-local
                               # garbage, OOB writes are dropped by Pallas.

    # TODO(synk): if xprof still shows exposed input DMA after the grid-step
    # rebalance, add pipeline_mode=pl.Buffered(3) on the x in_spec (costs one
    # extra input buffer of VMEM within the generation-aware budget).
    out = pl.pallas_call(
        functools.partial(_layernorm_kernel, eps=eps, d_valid=d),
        out_shape=jax.ShapeDtypeStruct((rows, d_pad), x.dtype),
        grid_spec=pltpu.PrefetchScalarGridSpec(
            num_scalar_prefetch=0,
            grid=(grid,),
            in_specs=[
                pl.BlockSpec((tr, d_pad), lambda i: (i, 0)),   # x row-tile
                pl.BlockSpec((1, d_pad), lambda i: (0, 0)),    # gamma (resident)
                pl.BlockSpec((1, d_pad), lambda i: (0, 0)),    # beta  (resident)
            ],
            out_specs=pl.BlockSpec((tr, d_pad), lambda i: (i, 0)),
        ),
        compiler_params=pltpu.CompilerParams(
            dimension_semantics=("parallel",),
            vmem_limit_bytes=vmem_limit),
    )(x2, gamma2, beta2)

    if d_pad != d:
        out = out[:, :d]
    return out.reshape(orig_shape)


# --------------------------------------------------------------------------
# Decoder: apply N decoder layers, then the (Pallas) LayerNorm.
# --------------------------------------------------------------------------
class Decoder:
    def __init__(self, layers, d_model, eps=1e-6):
        # `layers`: list of callables with signature
        #   layer(x, hidden_states, src_mask, tgt_mask,
        #         grams, gram_masks, nodes, node_masks) -> x
        # TODO(synk): the DecoderLayer forward is not defined in the provided
        # module source; layers are injected callables (identity in the demo).
        self.layers = layers
        # LayerNorm parameters, deterministic init (ones / zeros, as in torch).
        self.gamma = jnp.ones((d_model,), jnp.float32)
        self.beta = jnp.zeros((d_model,), jnp.float32)
        self.eps = eps

    def __call__(self, x, hidden_states, src_mask, tgt_mask,
                 grams, gram_masks, nodes, node_masks):
        for layer in self.layers:
            x = layer(x, hidden_states, src_mask, tgt_mask,
                      grams, gram_masks, nodes, node_masks)
        return pallas_layernorm(x, self.gamma, self.beta, eps=self.eps)


# --------------------------------------------------------------------------
# Demo / smoke test.
# --------------------------------------------------------------------------
if __name__ == "__main__":
    key = jax.random.PRNGKey(0)
    B, T, S, D = 2, 8, 10, 32       # batch, tgt seq, src seq, d_model
    N_LAYERS = 3

    ks = jax.random.split(key, 6)
    x = jax.random.normal(ks[0], (B, T, D), jnp.float32)
    hidden_states = jax.random.normal(ks[1], (B, S, D), jnp.float32)
    src_mask = jnp.ones((B, 1, S), jnp.float32)
    tgt_mask = jnp.tril(jnp.ones((B, T, T), jnp.float32))
    grams = jax.random.normal(ks[2], (B, S, D), jnp.float32)
    gram_masks = jnp.ones((B, 1, S), jnp.float32)
    nodes = jax.random.normal(ks[3], (B, S, D), jnp.float32)
    node_masks = jnp.ones((B, 1, S), jnp.float32)

    # Identity decoder layers (internals of the injected `layer` are unspecified).
    def identity_layer(x, *_):
        return x

    decoder = Decoder([identity_layer] * N_LAYERS, d_model=D)

    out = decoder(x, hidden_states, src_mask, tgt_mask,
                  grams, gram_masks, nodes, node_masks)
    out = jax.block_until_ready(out)

    # Reference check (pure JAX, torch LayerNorm-from-source semantics).
    mean = jnp.mean(x, axis=-1, keepdims=True)
    std = jnp.std(x, axis=-1, keepdims=True, ddof=1)
    ref = decoder.gamma * (x - mean) / (std + 1e-6) + decoder.beta
    assert out.shape == (B, T, D)
    assert jnp.allclose(out, ref, atol=1e-5, rtol=1e-5)

    # Second check at a shape that exercises the multi-step grid + padding path.
    B2, T2, D2 = 4, 512, 160        # rows=2048, d_model padded 160 -> 256
    x_big = jax.random.normal(ks[4], (B2, T2, D2), jnp.float32)
    g_big = jax.random.normal(ks[5], (D2,), jnp.float32)
    b_big = jnp.linspace(-1.0, 1.0, D2, dtype=jnp.float32)
    out_big = jax.block_until_ready(pallas_layernorm(x_big, g_big, b_big, eps=1e-6))
    mean_b = jnp.mean(x_big, axis=-1, keepdims=True)
    std_b = jnp.std(x_big, axis=-1, keepdims=True, ddof=1)
    ref_big = g_big * (x_big - mean_b) / (std_b + 1e-6) + b_big
    assert out_big.shape == (B2, T2, D2)
    assert jnp.allclose(out_big, ref_big, atol=1e-4, rtol=1e-4)

    print("KERNEL_OK")
</pallas_src>

<mosaic_0001>
module attributes {stable_mosaic.version = 11 : i64} {
  func.func @_layernorm_kernel(%arg0: i32, %arg1: memref<16x32xf32, #tpu.memory_space<vmem>>, %arg2: memref<1x32xf32, #tpu.memory_space<vmem>>, %arg3: memref<1x32xf32, #tpu.memory_space<vmem>>, %arg4: memref<16x32xf32, #tpu.memory_space<vmem>>) attributes {dimension_semantics = [#tpu.dimension_semantics<parallel>], iteration_bounds = array<i64: 1>, scalar_prefetch = 0 : i64, scratch_operands = 0 : i64, tpu.core_type = #tpu.core_type<tc>, window_params = [{transform_indices = @transform_0, window_bounds = array<i64: 16, 32>}, {pipeline_mode = #tpu.pipeline_mode<synchronous>, transform_indices = @transform_1, window_bounds = array<i64: 1, 32>}, {pipeline_mode = #tpu.pipeline_mode<synchronous>, transform_indices = @transform_2, window_bounds = array<i64: 1, 32>}, {transform_indices = @transform_3, window_bounds = array<i64: 16, 32>}]} {
    %c0 = arith.constant 0 : index
    %c0_0 = arith.constant 0 : index
    %0 = vector.load %arg1[%c0, %c0_0] : memref<16x32xf32, #tpu.memory_space<vmem>>, vector<16x32xf32>
    %cst = arith.constant dense<0.000000e+00> : vector<16xf32>
    %1 = vector.multi_reduction <add>, %0, %cst [1] : vector<16x32xf32> to vector<16xf32>
    %2 = vector.shape_cast %1 : vector<16xf32> to vector<16x1xf32>
    %cst_1 = arith.constant 3.125000e-02 : f32
    %3 = vector.broadcast %cst_1 : f32 to vector<16x1xf32>
    %4 = arith.mulf %2, %3 : vector<16x1xf32>
    %5 = vector.broadcast %4 : vector<16x1xf32> to vector<16x32xf32>
    %6 = arith.subf %0, %5 : vector<16x32xf32>
    %7 = arith.mulf %6, %6 : vector<16x32xf32>
    %cst_2 = arith.constant dense<0.000000e+00> : vector<16xf32>
    %8 = vector.multi_reduction <add>, %7, %cst_2 [1] : vector<16x32xf32> to vector<16xf32>
    %9 = vector.shape_cast %8 : vector<16xf32> to vector<16x1xf32>
    %cst_3 = arith.constant 0.0322580636 : f32
    %10 = vector.broadcast %cst_3 : f32 to vector<16x1xf32>
    %11 = arith.mulf %9, %10 : vector<16x1xf32>
    %12 = math.sqrt %11 : vector<16x1xf32>
    %cst_4 = arith.constant 9.99999997E-7 : f32
    %13 = vector.broadcast %cst_4 : f32 to vector<16x1xf32>
    %14 = arith.addf %12, %13 : vector<16x1xf32>
    %15 = tpu.reciprocal %14 : vector<16x1xf32> -> vector<16x1xf32>
    %c0_5 = arith.constant 0 : index
    %c0_6 = arith.constant 0 : index
    %16 = vector.load %arg2[%c0_5, %c0_6] : memref<1x32xf32, #tpu.memory_space<vmem>>, vector<1x32xf32>
    %c0_7 = arith.constant 0 : index
    %c0_8 = arith.constant 0 : index
    %17 = vector.load %arg3[%c0_7, %c0_8] : memref<1x32xf32, #tpu.memory_space<vmem>>, vector<1x32xf32>
    %18 = vector.broadcast %15 : vector<16x1xf32> to vector<16x32xf32>
    %19 = arith.mulf %6, %18 : vector<16x32xf32>
    %20 = vector.broadcast %16 : vector<1x32xf32> to vector<16x32xf32>
    %21 = arith.mulf %19, %20 : vector<16x32xf32>
    %22 = vector.broadcast %17 : vector<1x32xf32> to vector<16x32xf32>
    %23 = arith.addf %21, %22 : vector<16x32xf32>
    %c0_9 = arith.constant 0 : index
    %c0_10 = arith.constant 0 : index
    %24 = vector.load %arg4[%c0_9, %c0_10] : memref<16x32xf32, #tpu.memory_space<vmem>>, vector<16x32xf32>
    tpu.vector_store %arg4[%c0_9, %c0_10], %23 {strides = array<i32>} : memref<16x32xf32, #tpu.memory_space<vmem>>, vector<16x32xf32>,
    return
  }
  func.func @transform_0(%arg0: i32) -> (i32, i32) {
    %c0_i32 = arith.constant 0 : i32
    %c0_i32_0 = arith.constant 0 : i32
    return %arg0, %c0_i32 : i32, i32
  }
  func.func @transform_1(%arg0: i32) -> (i32, i32) {
    %c0_i32 = arith.constant 0 : i32
    %c0_i32_0 = arith.constant 0 : i32
    %c0_i32_1 = arith.constant 0 : i32
    return %c0_i32, %c0_i32_0 : i32, i32
  }
  func.func @transform_2(%arg0: i32) -> (i32, i32) {
    %c0_i32 = arith.constant 0 : i32
    %c0_i32_0 = arith.constant 0 : i32
    %c0_i32_1 = arith.constant 0 : i32
    return %c0_i32, %c0_i32_0 : i32, i32
  }
  func.func @transform_3(%arg0: i32) -> (i32, i32) {
    %c0_i32 = arith.constant 0 : i32
    %c0_i32_0 = arith.constant 0 : i32
    return %arg0, %c0_i32 : i32, i32
  }
}

</mosaic_0001>

<bundles_post_ra>
// kernel: tpu_custom_call.1
= control target key start
LH: loop header
LB: loop body
LE: loop exit
PB: predicated region body
PF: predicated region fallthrough
CT: control target
= control target key end

     0   :  { %8 = vsyncpa [#allocation3], 0  ;;  %s215_s0 = inlined_call_operand.hbm [shape: f32[16,32], index: 0, kind: input, shape index: {}]   ;;  %s216_s1 = inlined_call_operand.vmem [shape: f32[1,32], index: 1, kind: input, shape index: {}]   ;;  %s217_s2 = inlined_call_operand.vmem [shape: f32[1,32], index: 2, kind: input, shape index: {}]   ;;  %s218_s3 = inlined_call_operand.hbm [shape: f32[16,32], index: 3, kind: output, shape index: {}]  }
   0x1   :  { %9 = vsyncpa [#allocation4], 0  ;;  %s167_s12 = smov [#allocation2]  }
   0x2   :  { %s15_s13 = sshll.u32 %s167_s12, 4  ;;  %s16_s13 = int_to_ptr.vmem [resolvable:$true] %s15_s13 }
   0x3   :  { %s131_s14 = scalar_lea.vmem %s16_s13, 256  ;;  %p136_p1 = scmp.lt.s32.totalorder %s16_s13, %s16_s13 }
   0x4   :  { %p132_p0 = scmp.ne.s32.totalorder %s16_s13, %s131_s14  ;;  %p137_p2 = scmp.lt.s32.totalorder %s131_s14, %s131_s14 }
   0x6   :  { %p138_p3 = por %p137_p2, %p136_p1 }
   0x8   :  { %p139_p4 = pnand %p138_p3, %p132_p0 }
   0xa   :  { %142 = shalt.err (!%p139_p4)
}
   0xb   :  { %s168_s15 = smov 128   ;;  %s169_s16 = smov 8  }
   0xc   :  { %21 = dma.hbm_to_vmem [thread:$0]  %s215_s0, 256, %s16_s13, [#allocation3], %s168_s15, %s168_s15, %s169_s16  }
   0xd   :  { %163 = dma.done.wait [#allocation3], 256  }
   0xe   :  { %164 = vsyncadd [#allocation3], 4294967040  ;;  %vm31_vm0 = vcmask 261120   ;;  %v29_v0 = vld [vmem:[#allocation2] sm:$0xff]  ;;  %v30_v1 = vld [vmem:[#allocation2 + $0x8] sm:$0xff]  ;;  %s170_s22 = smov [#allocation5]  }
   0xf   :  { %v32_v2 = vsel %vm31_vm0, %v29_v0, 0.0  ;;  %v35_v3 = vsel %vm31_vm0, %v30_v1, 0.0  ;;  %v109_v31 = vld [vmem:[%s216_s1] ss:$0 sm:$0xff]  ;;  %s97_s23 = sshll.u32 %s170_s22, 4  ;;  %s98_s23 = int_to_ptr.vmem [resolvable:$true] %s97_s23 }
  0x10   :  { %33 = vadd.xlane.f32.xlu0 %v32_v2  ;;  %v110_v33 = vld [vmem:[%s217_s2] ss:$0 sm:$0xff]  ;;  %s143_s24 = scalar_lea.vmem %s98_s23, 256  ;;  %p148_p6 = scmp.lt.s32.totalorder %s98_s23, %s98_s23 }
  0x11   :  { %p144_p5 = scmp.ne.s32.totalorder %s98_s23, %s143_s24  ;;  %p149_p7 = scmp.lt.s32.totalorder %s143_s24, %s143_s24 }
  0x13   :  { %p150_p8 = por %p149_p7, %p148_p6 }
  0x14   :  { %36 = vadd.xlane.f32.xlu0 %v35_v3 }
  0x15   :  { %p151_p9 = pnand %p150_p8, %p144_p5 }
  0x99   :  { %v34_v4 = vpop.xlane.xlu0 %33 }
  0x9a   :  { %v38_v5 = vmul.f32 0.03125, %v34_v4 }
  0x9c   :  { %v40_v6 = vsub.f32 %v29_v0, %v38_v5 }
  0x9d   :  { %v37_v7 = vpop.xlane.xlu0 %36 }
  0x9e   :  { %v39_v8 = vmul.f32 0.03125, %v37_v7  ;;  %v42_v9 = vmul.f32 %v40_v6, %v40_v6 }
  0xa0   :  { %v41_v10 = vsub.f32 %v30_v1, %v39_v8  ;;  %v44_v11 = vsel %vm31_vm0, %v42_v9, 0.0 }
  0xa1   :  { %45 = vadd.xlane.f32.xlu1 %v44_v11 }
  0xa2   :  { %v43_v12 = vmul.f32 %v41_v10, %v41_v10 }
  0xa4   :  { %v47_v13 = vsel %vm31_vm0, %v43_v12, 0.0 }
  0xa5   :  { %48 = vadd.xlane.f32.xlu1 %v47_v13 }
 0x12a   :  { %v46_v14 = vpop.xlane.xlu1 %45 }
 0x12b   :  { %v50_v15 = vmul.f32 0.032258064, %v46_v14 }
 0x12d   :  { %115 = vrsqrt.f32 %v50_v15  ;;  %vm54_vm1 = vcmp.eq.f32.partialorder %v50_v15, inf  ;;  %v57_v20 = vand.u32 2147483648, %v50_v15  ;;  %vm56_vm2 = vcmp.eq.f32.partialorder %v50_v15, 0.0 }
 0x12e   :  { %v49_v16 = vpop.xlane.xlu1 %48 }
 0x12f   :  { %v51_v17 = vmul.f32 0.032258064, %v49_v16 }
 0x131   :  { %117 = vrsqrt.f32 %v51_v17  ;;  %vm61_vm3 = vcmp.eq.f32.partialorder %v51_v17, inf  ;;  %v64_v26 = vand.u32 2147483648, %v51_v17  ;;  %vm63_vm4 = vcmp.eq.f32.partialorder %v51_v17, 0.0 }
 0x13a   :  { %v116_v18 = vpop.eup %115 }
 0x13b   :  { %v53_v19 = vmul.f32 %v116_v18, %v50_v15 }
 0x13d   :  { %v55_v21 = vsel %vm54_vm1, %v50_v15, %v53_v19 }
 0x13e   :  { %v118_v22 = vpop.eup %117  ;;  %v58_v23 = vsel %vm56_vm2, %v57_v20, %v55_v21 }
 0x13f   :  { %v66_v24 = vadd.f32 1e-06, %v58_v23  ;;  %v60_v25 = vmul.f32 %v118_v22, %v51_v17 }
 0x141   :  { %119 = vrcp.f32 %v66_v24  ;;  %v62_v27 = vsel %vm61_vm3, %v51_v17, %v60_v25 }
 0x142   :  { %v65_v28 = vsel %vm63_vm4, %v64_v26, %v62_v27 }
 0x143   :  { %v67_v29 = vadd.f32 1e-06, %v65_v28 }
 0x145   :  { %121 = vrcp.f32 %v67_v29 }
 0x14e   :  { %v120_v30 = vpop.eup %119 }
 0x14f   :  { %v72_v32 = vmul.f32 %v120_v30, %v40_v6 }
 0x151   :  { %v80_v34 = vmul.f32 %v109_v31, %v72_v32 }
 0x152   :  { %v122_v35 = vpop.eup %121 }
 0x153   :  { %v73_v36 = vmul.f32 %v122_v35, %v41_v10  ;;  %v88_v37 = vadd.f32 %v110_v33, %v80_v34 }
 0x155   :  { %v81_v38 = vmul.f32 %v109_v31, %v73_v36  ;;  %90 = vst.msk [vmem:[#allocation5] sm:$0xff] %vm31_vm0, %v88_v37 }
 0x157   :  { %v89_v39 = vadd.f32 %v110_v33, %v81_v38 }
 0x159   :  { %91 = vst.msk [vmem:[#allocation5 + $0x8] sm:$0xff] %vm31_vm0, %v89_v39 }
 0x15a   :  { %154 = shalt.err (!%p151_p9)
}
 0x15b   :  { %103 = dma.vmem_to_hbm [thread:$0]  %s98_s23, 256, %s218_s3, [#allocation4], %s168_s15, %s168_s15, %s169_s16  }
 0x15c   :  { %165 = dma.done.wait [#allocation4], 256  }
 0x15d   :  { %166 = vsyncadd [#allocation4], 4294967040 }
 0x15e   :  { %107 = vsyncpa [#allocation3], 1 }
 0x15f   :  { %108 = vsyncpa [#allocation4], 1 }

</bundles_post_ra>
